<compile_context>
chip_gen: v5e
topology: v5e:2x2
jax: 0.10.0
libtpu: 0.0.40
codegen_flags: <defaults>
</compile_context>

<pallas_src>
import math
import jax
import jax.numpy as jnp
from jax.experimental import pallas as pl
from jax.experimental.pallas import tpu as pltpu


def _round_up(n, m):
    return ((n + m - 1) // m) * m


def lambda_kernel(x_ref, w_ref, b_ref, eps_ref, z_ref, mean_ref, logvar_ref):
    """x:(Tb,H) bf16  w:(H,2L) bf16  b:(1,2L) f32  eps:(Tb,L) f32  outs:(Tb,L) f32."""
    L = eps_ref.shape[-1]
    # single fused MXU matmul (f32 accumulation) + resident bias add
    ml = jnp.dot(x_ref[...], w_ref[...],
                 preferred_element_type=jnp.float32) + b_ref[...]
    mean = ml[:, :L]
    logvar = ml[:, L:]
    std = jnp.exp(0.5 * logvar)            # EUP
    z = eps_ref[...] * std + mean          # VPU
    z_ref[...] = z
    mean_ref[...] = mean
    logvar_ref[...] = logvar


def _vmem_budget_bytes():
    """Generation-aware scoped-VMEM budget: ~3/4 of physical, capped at 96 MiB.

    v5e/v6e (128 MiB physical) -> 96 MiB; v7x (64 MiB) -> 48 MiB.
    Falls back to a v7x-safe 48 MiB if the query is unavailable."""
    try:
        phys = int(pltpu.get_tpu_info().vmem_capacity_bytes)
    except Exception:
        phys = 64 * 1024 * 1024
    return min(phys * 3 // 4, 96 * 1024 * 1024)


def _choose_tile_b(B, H, L, in_bytes, vmem_budget):
    """Pick the largest batch tile that fits the VMEM budget (amortizes the
    ~0.35us per-grid-step overhead), keeps the sublane rule, and leaves >=2
    grid steps when B is large (v7x megacore)."""
    # Double-buffered streamed rows: x (in_bytes) + eps + z + mean + logvar (f32).
    per_row = 2 * (H * in_bytes + 4 * L * 4)
    # Resident fused weight + bias (BlockSpec still double-buffers them).
    static = 2 * (H * 2 * L * in_bytes + 2 * L * 4)
    tb = (int(vmem_budget * 0.8) - static) // max(per_row, 1)
    tb = max(8, min(tb, 4096))
    tb = (tb // 8) * 8
    if tb >= B:
        if B >= 16:
            # force >=2 grid steps so the "parallel" axis can use both v7x cores
            tb = _round_up((B + 1) // 2, 8)   # always < B for B >= 16
        else:
            tb = B                            # single full block (legal for any B)
    return tb


def lambda_forward(x, w_mean, b_mean, w_logvar, b_logvar, eps,
                   tile_b=None, use_bf16_inputs=True):
    """x: (B, H); w_*: (H, L); b_*: (1, L); eps: (B, L). Returns (z, mean, logvar)."""
    B, H = x.shape
    L = w_mean.shape[1]

    in_dtype = jnp.bfloat16 if use_bf16_inputs else jnp.float32
    in_bytes = 2 if use_bf16_inputs else 4

    # Fuse the two linear layers: one (H, 2L) weight, one (1, 2L) bias.
    w2 = jnp.concatenate([w_mean, w_logvar], axis=1).astype(in_dtype)
    b2 = jnp.concatenate([b_mean, b_logvar], axis=1).astype(jnp.float32)
    xq = x.astype(in_dtype)
    eps = eps.astype(jnp.float32)

    vmem_budget = _vmem_budget_bytes()
    if tile_b is None:
        tile_b = _choose_tile_b(B, H, L, in_bytes, vmem_budget)
    else:
        tile_b = int(tile_b)
        if tile_b >= B:
            tile_b = B                              # single full block
        else:
            tile_b = max(8, (tile_b // 8) * 8)      # sublane rule when grid > 1

    grid = (pl.cdiv(B, tile_b),)   # ragged last block handled by Pallas, no pad

    z, mean, logvar = pl.pallas_call(
        lambda_kernel,
        out_shape=(
            jax.ShapeDtypeStruct((B, L), jnp.float32),
            jax.ShapeDtypeStruct((B, L), jnp.float32),
            jax.ShapeDtypeStruct((B, L), jnp.float32),
        ),
        grid_spec=pltpu.PrefetchScalarGridSpec(
            num_scalar_prefetch=0,
            grid=grid,
            in_specs=[
                pl.BlockSpec((tile_b, H), lambda i: (i, 0)),   # x   (streamed, bf16)
                pl.BlockSpec((H, 2 * L), lambda i: (0, 0)),    # fused W (resident)
                pl.BlockSpec((1, 2 * L), lambda i: (0, 0)),    # fused b (resident)
                pl.BlockSpec((tile_b, L), lambda i: (i, 0)),   # eps (streamed, f32)
            ],
            out_specs=[
                pl.BlockSpec((tile_b, L), lambda i: (i, 0)),   # z
                pl.BlockSpec((tile_b, L), lambda i: (i, 0)),   # mean
                pl.BlockSpec((tile_b, L), lambda i: (i, 0)),   # logvar
            ],
        ),
        compiler_params=pltpu.CompilerParams(
            dimension_semantics=("parallel",),        # megacore shard on v7x
            vmem_limit_bytes=int(vmem_budget),
        ),
    )(xq, w2, b2, eps)
    return z, mean, logvar


def xavier_uniform(key, fan_in, fan_out):
    # matches torch.nn.init.xavier_uniform_ (gain=1), stored transposed (H, L)
    bound = math.sqrt(6.0 / (fan_in + fan_out))
    return jax.random.uniform(key, (fan_in, fan_out), jnp.float32, -bound, bound)


def linear_bias(key, fan_in, fan_out):
    # matches default nn.Linear bias init: U(-1/sqrt(fan_in), 1/sqrt(fan_in))
    bound = 1.0 / math.sqrt(fan_in)
    return jax.random.uniform(key, (1, fan_out), jnp.float32, -bound, bound)


if __name__ == "__main__":
    B, HIDDEN, LATENT = 8, 32, 16

    key = jax.random.PRNGKey(0)
    k_x, k_wm, k_bm, k_wv, k_bv, k_eps = jax.random.split(key, 6)

    x = jax.random.normal(k_x, (B, HIDDEN), jnp.float32)
    w_mean = xavier_uniform(k_wm, HIDDEN, LATENT)
    b_mean = linear_bias(k_bm, HIDDEN, LATENT)
    w_logvar = xavier_uniform(k_wv, HIDDEN, LATENT)
    b_logvar = linear_bias(k_bv, HIDDEN, LATENT)
    eps = jax.random.normal(k_eps, (B, LATENT), jnp.float32)   # torch.randn_like(std)

    fwd = jax.jit(lambda_forward)
    z, mean, logvar = fwd(x, w_mean, b_mean, w_logvar, b_logvar, eps)
    jax.block_until_ready((z, mean, logvar))

    # Pure-JAX reference using the same bf16-quantized matmul inputs with f32
    # accumulation (matches the kernel's deliberate bandwidth/precision tradeoff).
    xq = x.astype(jnp.bfloat16).astype(jnp.float32)
    wq = jnp.concatenate([w_mean, w_logvar], axis=1).astype(jnp.bfloat16).astype(jnp.float32)
    ml = jnp.dot(xq, wq, precision=jax.lax.Precision.HIGHEST) \
        + jnp.concatenate([b_mean, b_logvar], axis=1)
    ref_mean, ref_logvar = ml[:, :LATENT], ml[:, LATENT:]
    ref_z = eps * jnp.exp(0.5 * ref_logvar) + ref_mean

    assert jnp.allclose(mean, ref_mean, atol=1e-3, rtol=1e-3), "mean mismatch"
    assert jnp.allclose(logvar, ref_logvar, atol=1e-3, rtol=1e-3), "logvar mismatch"
    assert jnp.allclose(z, ref_z, atol=1e-3, rtol=1e-3), "z mismatch"

    print("KERNEL_OK")
</pallas_src>

<mosaic_0001>
module attributes {stable_mosaic.version = 11 : i64} {
  func.func @lambda_kernel(%arg0: i32, %arg1: memref<8x32xbf16, #tpu.memory_space<vmem>>, %arg2: memref<32x32xbf16, #tpu.memory_space<vmem>>, %arg3: memref<1x32xf32, #tpu.memory_space<vmem>>, %arg4: memref<8x16xf32, #tpu.memory_space<vmem>>, %arg5: memref<8x16xf32, #tpu.memory_space<vmem>>, %arg6: memref<8x16xf32, #tpu.memory_space<vmem>>, %arg7: memref<8x16xf32, #tpu.memory_space<vmem>>) attributes {dimension_semantics = [#tpu.dimension_semantics<parallel>], iteration_bounds = array<i64: 1>, scalar_prefetch = 0 : i64, scratch_operands = 0 : i64, tpu.core_type = #tpu.core_type<tc>, window_params = [{transform_indices = @transform_0, window_bounds = array<i64: 8, 32>}, {pipeline_mode = #tpu.pipeline_mode<synchronous>, transform_indices = @transform_1, window_bounds = array<i64: 32, 32>}, {pipeline_mode = #tpu.pipeline_mode<synchronous>, transform_indices = @transform_2, window_bounds = array<i64: 1, 32>}, {transform_indices = @transform_3, window_bounds = array<i64: 8, 16>}, {transform_indices = @transform_4, window_bounds = array<i64: 8, 16>}, {transform_indices = @transform_5, window_bounds = array<i64: 8, 16>}, {transform_indices = @transform_6, window_bounds = array<i64: 8, 16>}]} {
    %c0 = arith.constant 0 : index
    %c0_0 = arith.constant 0 : index
    %0 = vector.load %arg1[%c0, %c0_0] : memref<8x32xbf16, #tpu.memory_space<vmem>>, vector<8x32xbf16>
    %c0_1 = arith.constant 0 : index
    %c0_2 = arith.constant 0 : index
    %1 = vector.load %arg2[%c0_1, %c0_2] : memref<32x32xbf16, #tpu.memory_space<vmem>>, vector<32x32xbf16>
    %cst = arith.constant dense<0.000000e+00> : vector<8x32xf32>
    %2 = tpu.matmul %0, %1, %cst {dimension_numbers = #tpu.dot_dimension_numbers<[1], [0], [0], [1], [0, 0, 1, 1], [], []>} : vector<8x32xbf16>, vector<32x32xbf16>, vector<8x32xf32> -> vector<8x32xf32>
    %c0_3 = arith.constant 0 : index
    %c0_4 = arith.constant 0 : index
    %3 = vector.load %arg3[%c0_3, %c0_4] : memref<1x32xf32, #tpu.memory_space<vmem>>, vector<1x32xf32>
    %4 = vector.broadcast %3 : vector<1x32xf32> to vector<8x32xf32>
    %5 = arith.addf %2, %4 : vector<8x32xf32>
    %6 = vector.extract_strided_slice %5 {offsets = [0, 0], sizes = [8, 16], strides = [1, 1]} : vector<8x32xf32> to vector<8x16xf32>
    %7 = vector.extract_strided_slice %5 {offsets = [0, 16], sizes = [8, 16], strides = [1, 1]} : vector<8x32xf32> to vector<8x16xf32>
    %cst_5 = arith.constant 5.000000e-01 : f32
    %8 = vector.broadcast %cst_5 : f32 to vector<8x16xf32>
    %9 = arith.mulf %8, %7 : vector<8x16xf32>
    %10 = math.exp %9 : vector<8x16xf32>
    %c0_6 = arith.constant 0 : index
    %c0_7 = arith.constant 0 : index
    %11 = vector.load %arg4[%c0_6, %c0_7] : memref<8x16xf32, #tpu.memory_space<vmem>>, vector<8x16xf32>
    %12 = arith.mulf %11, %10 : vector<8x16xf32>
    %13 = arith.addf %12, %6 : vector<8x16xf32>
    %c0_8 = arith.constant 0 : index
    %c0_9 = arith.constant 0 : index
    %14 = vector.load %arg5[%c0_8, %c0_9] : memref<8x16xf32, #tpu.memory_space<vmem>>, vector<8x16xf32>
    tpu.vector_store %arg5[%c0_8, %c0_9], %13 {strides = array<i32>} : memref<8x16xf32, #tpu.memory_space<vmem>>, vector<8x16xf32>,
    %c0_10 = arith.constant 0 : index
    %c0_11 = arith.constant 0 : index
    %15 = vector.load %arg6[%c0_10, %c0_11] : memref<8x16xf32, #tpu.memory_space<vmem>>, vector<8x16xf32>
    tpu.vector_store %arg6[%c0_10, %c0_11], %6 {strides = array<i32>} : memref<8x16xf32, #tpu.memory_space<vmem>>, vector<8x16xf32>,
    %c0_12 = arith.constant 0 : index
    %c0_13 = arith.constant 0 : index
    %16 = vector.load %arg7[%c0_12, %c0_13] : memref<8x16xf32, #tpu.memory_space<vmem>>, vector<8x16xf32>
    tpu.vector_store %arg7[%c0_12, %c0_13], %7 {strides = array<i32>} : memref<8x16xf32, #tpu.memory_space<vmem>>, vector<8x16xf32>,
    return
  }
  func.func @transform_0(%arg0: i32) -> (i32, i32) {
    %c0_i32 = arith.constant 0 : i32
    %c0_i32_0 = arith.constant 0 : i32
    return %arg0, %c0_i32 : i32, i32
  }
  func.func @transform_1(%arg0: i32) -> (i32, i32) {
    %c0_i32 = arith.constant 0 : i32
    %c0_i32_0 = arith.constant 0 : i32
    %c0_i32_1 = arith.constant 0 : i32
    return %c0_i32, %c0_i32_0 : i32, i32
  }
  func.func @transform_2(%arg0: i32) -> (i32, i32) {
    %c0_i32 = arith.constant 0 : i32
    %c0_i32_0 = arith.constant 0 : i32
    %c0_i32_1 = arith.constant 0 : i32
    return %c0_i32, %c0_i32_0 : i32, i32
  }
  func.func @transform_3(%arg0: i32) -> (i32, i32) {
    %c0_i32 = arith.constant 0 : i32
    %c0_i32_0 = arith.constant 0 : i32
    return %arg0, %c0_i32 : i32, i32
  }
  func.func @transform_4(%arg0: i32) -> (i32, i32) {
    %c0_i32 = arith.constant 0 : i32
    %c0_i32_0 = arith.constant 0 : i32
    return %arg0, %c0_i32 : i32, i32
  }
  func.func @transform_5(%arg0: i32) -> (i32, i32) {
    %c0_i32 = arith.constant 0 : i32
    %c0_i32_0 = arith.constant 0 : i32
    return %arg0, %c0_i32 : i32, i32
  }
  func.func @transform_6(%arg0: i32) -> (i32, i32) {
    %c0_i32 = arith.constant 0 : i32
    %c0_i32_0 = arith.constant 0 : i32
    return %arg0, %c0_i32 : i32, i32
  }
}

</mosaic_0001>

<bundles_post_ra>
// kernel: lambda_forward.1
= control target key start
LH: loop header
LB: loop body
LE: loop exit
PB: predicated region body
PF: predicated region fallthrough
CT: control target
= control target key end

     0   :  { %12 = vsyncpa [#allocation3], 0  ;;  %s286_s0 = inlined_call_operand.vmem [shape: bf16[8,32], index: 0, kind: input, shape index: {}]   ;;  %s287_s1 = inlined_call_operand.vmem [shape: bf16[32,32], index: 1, kind: input, shape index: {}]   ;;  %s288_s2 = inlined_call_operand.vmem [shape: f32[1,32], index: 2, kind: input, shape index: {}]   ;;  %s289_s3 = inlined_call_operand.vmem [shape: f32[8,16], index: 3, kind: input, shape index: {}]   ;;  %s290_s4 = inlined_call_operand.hbm [shape: f32[8,16], index: 4, kind: output, shape index: {0}]   ;;  %s291_s5 = inlined_call_operand.hbm [shape: f32[8,16], index: 5, kind: output, shape index: {1}]   ;;  %s292_s6 = inlined_call_operand.hbm [shape: f32[8,16], index: 6, kind: output, shape index: {2}]  }
   0x1   :  { %v136_v0 = vld [vmem:[%s287_s1 + $0x8] sm:$0xff] }
   0x2   :  { %13 = vsyncpa [#allocation5], 0  ;;  %54 = vmatpush.bf16.msra.mxu0 %v136_v0  ;;  %v135_v1 = vld [vmem:[%s287_s1] sm:$0xff]  ;;  %vm44_vm0 = vcmask 261120   ;;  %vm71_vm1 = vcmask 130048   ;;  %s220_s1 = smov [#allocation4]  }
   0x3   :  { %v23_v2 = vld [vmem:[%s286_s0] sm:$0xf]  ;;  %s95_s29 = sshll.u32 %s220_s1, 4  ;;  %s97_s0 = sshll.u32 %s291_s5, 4  ;;  %s96_s29 = int_to_ptr.vmem [resolvable:$true] %s95_s29  ;;  %s98_s0 = int_to_ptr.hbm [resolvable:$true] %s97_s0 }
   0x4   :  { %v141_v3 = vld [vmem:[%s288_s2] ss:$0 sm:$0xff]  ;;  %s221_s2 = smov 112   ;;  %s222_s10 = smov [#allocation2]  }
   0x5   :  { %v64_v10 = vld [vmem:[%s289_s3] sm:$0xff]  ;;  %s84_s11 = sshll.u32 %s222_s10, 4  ;;  %s86_s14 = sshll.u32 %s290_s4, 4  ;;  %s85_s11 = int_to_ptr.vmem [resolvable:$true] %s84_s11  ;;  %s87_s14 = int_to_ptr.hbm [resolvable:$true] %s86_s14 }
   0x6   :  { %55 = vmatpush.bf16.msra.mxu0 %v135_v1  ;;  %s223_s5 = smov [#allocation6]   ;;  %s108_s18 = sshll.u32 %s292_s6, 4  ;;  %s109_s18 = int_to_ptr.hbm [resolvable:$true] %s108_s18 }
   0x7   :  { %s106_s15 = sshll.u32 %s223_s5, 4  ;;  %s107_s15 = int_to_ptr.vmem [resolvable:$true] %s106_s15 }
   0x9   :  { %134 = vmatmul.msk.bf16.vlgmr.msra.gmra.mxu0 %vm44_vm0, %v23_v2 }
  0x86   :  { %v57_v4 = vpop.f32.mrf.mxu0 }
  0x87   :  { %v58_v5 = vadd.f32 %v141_v3, %v57_v4 }
  0x89   :  { %v61_v6 = vmul.f32 0.5, %v58_v5  ;;  %73 = vst.msk [vmem:[#allocation4] sm:$0xff] %vm71_vm1, %v58_v5 }
  0x8a   :  { %100 = dma.vmem_to_hbm [thread:$0]  %s96_s29, 128, %s98_s0, [#allocation5]  }
  0x8b   :  { %v62_v7 = vmul.f32 1.442695, %v61_v6 }
  0x8d   :  { %142 = vpow2.f32 %v62_v7 }
  0x8e   :  { %v59_v8 = vpop.f32.mrf.mxu0 }
  0x93   :  { %v143_v9 = vpop.eup %142 }
  0x94   :  { %66 = vrot.lane.b32.xlu0 %v143_v9, %s221_s2 }
  0x9c   :  { %75 = vrot.lane.b32.xlu0 %v58_v5, %s221_s2 }
 0x106   :  { %v67_v11 = vpop.permute.xlu0 %66 }
 0x107   :  { %v69_v12 = vmul.f32 %v67_v11, %v64_v10 }
 0x109   :  { %v70_v13 = vadd.f32 %v69_v12, %v58_v5 }
 0x10b   :  { %72 = vst.msk [vmem:[#allocation2] sm:$0xff] %vm71_vm1, %v70_v13 }
 0x10c   :  { %89 = dma.vmem_to_hbm [thread:$0]  %s85_s11, 128, %s87_s14, [#allocation3]  }
 0x10e   :  { %v76_v14 = vpop.permute.xlu0 %75 }
 0x10f   :  { %78 = vst.msk [vmem:[#allocation6] sm:$0xff] %vm71_vm1, %v76_v14 }
 0x110   :  { %111 = dma.vmem_to_hbm [thread:$0]  %s107_s15, 128, %s109_s18, [#allocation5]  }
 0x111   :  { %216 = dma.done.wait [#allocation3], 128  }
 0x112   :  { %217 = vsyncadd [#allocation3], 4294967168 }
 0x113   :  { %218 = dma.done.wait [#allocation5], 256  }
 0x114   :  { %219 = vsyncadd [#allocation5], 4294967040 }
 0x115   :  { %124 = vsyncpa [#allocation3], 1 }
 0x116   :  { %125 = vsyncpa [#allocation5], 1 }

</bundles_post_ra>
